<compile_context>
chip_gen: v7x
topology: tpu7x:2x2x1
jax: 0.10.0
libtpu: 0.0.40
codegen_flags: <defaults>
</compile_context>

<pallas_src>
import jax
import jax.numpy as jnp
from jax.experimental import pallas as pl
from jax.experimental.pallas import tpu as pltpu


def _round_up(x: int, m: int) -> int:
    return (x + m - 1) // m * m


# ----------------------------------------------------------------------------
# Kernel: fused Linear -> ReLU -> Linear -> ReLU -> Linear on one batch tile,
# fully transposed (features on sublanes / M, batch on lanes / N).
# ----------------------------------------------------------------------------
def mlp_kernel(x_ref, w1_ref, b1_ref, w2_ref, b2_ref, w3_ref, b3_ref, o_ref):
    # x tile arrives as raw f32 (TB, F); cast to bf16 in-kernel (VPU, hidden
    # under MXU work) so the wrapper never re-materializes x in HBM.
    xb = x_ref[...].astype(w1_ref.dtype)                       # (TB, F) bf16

    # Layer 1: contract F on both operands -> (n1, TB); batch on lanes.
    h1 = jax.lax.dot_general(
        w1_ref[...], xb,
        dimension_numbers=(((1,), (1,)), ((), ())),
        preferred_element_type=jnp.float32)                    # (n1, TB)
    h1 = jnp.maximum(h1 + b1_ref[...], 0.0)                    # bias (n1,1) bcast on lanes

    # Layer 2: (n2, n1) @ (n1, TB) -> (n2, TB).
    h2 = jnp.dot(w2_ref[...], h1.astype(w2_ref.dtype),
                 preferred_element_type=jnp.float32)
    h2 = jnp.maximum(h2 + b2_ref[...], 0.0)

    # Layer 3: (OF, n2) @ (n2, TB) -> (OF, TB); lane-dense store for any OF.
    out = jnp.dot(w3_ref[...], h2.astype(w3_ref.dtype),
                  preferred_element_type=jnp.float32)
    out = out + b3_ref[...]
    o_ref[...] = out.astype(o_ref.dtype)


# ----------------------------------------------------------------------------
# Tile choice: batch is the lane dim of the transposed output, so multi-tile
# grids need tb % 128 == 0; also try to emit >= 2 grid steps (v7x megacore).
# ----------------------------------------------------------------------------
def _choose_tile(B: int, block_b: int) -> int:
    tb = min(block_b, B)
    if tb >= B:                       # whole batch fits in one tile
        if B <= 128:                  # too small to split into 128-wide lane tiles
            return B
        tb = pl.cdiv(B, 2)            # split so v7x's 2 TCs both get work
    tb = _round_up(tb, 128)
    return tb if tb < B else B


# ----------------------------------------------------------------------------
# Wrapper: weight prep (tiny), BlockSpecs, grid, output transpose/squeeze.
# ----------------------------------------------------------------------------
def linear_model_forward(x, params, *, block_b: int = 8192,
                         compute_dtype=jnp.bfloat16):
    """Fused MLP forward. x: (B, in_features) f32. Returns torch.squeeze-like output."""
    (w1, b1), (w2, b2), (w3, b3) = params
    B, F = x.shape
    n1, n2, OF = w1.shape[1], w2.shape[1], w3.shape[1]

    tb = _choose_tile(B, block_b)
    grid = pl.cdiv(B, tb)

    # Tiny (<=32x32) weight/bias reshapes; negligible vs. streaming x.
    w1t = w1.T.astype(compute_dtype)        # (n1, F)
    w2t = w2.T.astype(compute_dtype)        # (n2, n1)
    w3t = w3.T.astype(compute_dtype)        # (OF, n2)
    b1t = b1.reshape(n1, 1)                 # f32 (n,1): broadcast along lanes
    b2t = b2.reshape(n2, 1)
    b3t = b3.reshape(OF, 1)

    def resident(arr):
        # Constant block index -> stays in VMEM across all grid steps (no re-DMA).
        return pl.BlockSpec(arr.shape, lambda i: (0, 0))

    flops = 2 * B * (F * n1 + n1 * n2 + n2 * OF)
    bytes_accessed = int(
        x.size * x.dtype.itemsize + B * OF * 4
        + sum(int(a.size) * a.dtype.itemsize
              for a in (w1t, b1t, w2t, b2t, w3t, b3t)))

    out = pl.pallas_call(
        mlp_kernel,
        out_shape=jax.ShapeDtypeStruct((OF, B), jnp.float32),
        grid=(grid,),
        in_specs=[
            pl.BlockSpec((tb, F), lambda i: (i, 0)),   # x: streamed f32 batch tiles
            resident(w1t), resident(b1t),
            resident(w2t), resident(b2t),
            resident(w3t), resident(b3t),
        ],
        out_specs=pl.BlockSpec((OF, tb), lambda i: (0, i)),   # batch on lanes
        compiler_params=pltpu.CompilerParams(
            dimension_semantics=("parallel",)),
        cost_estimate=pl.CostEstimate(flops=flops, transcendentals=0,
                                      bytes_accessed=bytes_accessed),
    )(x, w1t, b1t, w2t, b2t, w3t, b3t)

    if OF > 1:
        out = out.T        # back to torch's (B, OF) layout before squeeze
    # torch.squeeze removes all size-1 dims (glue, outside the kernel).
    return jnp.squeeze(out)


# ----------------------------------------------------------------------------
# Parameter init (xavier_uniform weights like the module; PyTorch-style biases).
# Weights stored as (fan_in, fan_out) so the reference does x @ W.
# ----------------------------------------------------------------------------
def xavier_uniform(key, fan_in, fan_out):
    bound = jnp.sqrt(6.0 / (fan_in + fan_out))
    return jax.random.uniform(key, (fan_in, fan_out), jnp.float32, -bound, bound)


def bias_init(key, fan_in, fan_out):
    bound = 1.0 / jnp.sqrt(fan_in)
    return jax.random.uniform(key, (1, fan_out), jnp.float32, -bound, bound)


def init_params(key, in_features, neurons, out_features):
    dims = [in_features] + list(neurons) + [out_features]
    params = []
    for i in range(len(dims) - 1):
        key, kw, kb = jax.random.split(key, 3)
        params.append((xavier_uniform(kw, dims[i], dims[i + 1]),
                       bias_init(kb, dims[i], dims[i + 1])))
    return params


def ref_forward(x, params, compute_dtype=jnp.bfloat16):
    """Pure-JAX reference with the same bf16-operand / f32-accumulate recipe."""
    (w1, b1), (w2, b2), (w3, b3) = params
    h = jnp.dot(x.astype(compute_dtype), w1.astype(compute_dtype),
                preferred_element_type=jnp.float32)
    h = jnp.maximum(h + b1, 0.0)
    h = jnp.dot(h.astype(compute_dtype), w2.astype(compute_dtype),
                preferred_element_type=jnp.float32)
    h = jnp.maximum(h + b2, 0.0)
    out = jnp.dot(h.astype(compute_dtype), w3.astype(compute_dtype),
                  preferred_element_type=jnp.float32) + b3
    return jnp.squeeze(out)


if __name__ == "__main__":
    in_features = 16
    neurons = [32, 32]
    out_features = 1   # forward squeezes (B, 1) -> (B,)

    key = jax.random.PRNGKey(0)
    kx, kp = jax.random.split(key)
    params = init_params(kp, in_features, neurons, out_features)

    # 1) Small single-tile case (B=8).
    x_small = jax.random.normal(kx, (8, in_features), jnp.float32)
    y_small = jax.block_until_ready(linear_model_forward(x_small, params))
    assert y_small.shape == (8,), y_small.shape
    assert jnp.allclose(y_small, ref_forward(x_small, params), atol=1e-2, rtol=1e-2)

    # 2) Ragged single-tile batch (B=13, no padding anywhere).
    x_rag = jax.random.normal(jax.random.PRNGKey(2), (13, in_features), jnp.float32)
    y_rag = jax.block_until_ready(linear_model_forward(x_rag, params))
    assert y_rag.shape == (13,), y_rag.shape
    assert jnp.allclose(y_rag, ref_forward(x_rag, params), atol=1e-2, rtol=1e-2)

    # 3) Multi-tile grid with a ragged LAST block (B=300, tb=128 -> blocks 128/128/44).
    x_part = jax.random.normal(jax.random.PRNGKey(3), (300, in_features), jnp.float32)
    y_part = jax.block_until_ready(linear_model_forward(x_part, params, block_b=128))
    assert y_part.shape == (300,), y_part.shape
    assert jnp.allclose(y_part, ref_forward(x_part, params), atol=1e-2, rtol=1e-2)

    # 4) Multi-tile, evenly divided pipelined grid (B=512, tb=128, grid=4).
    x_big = jax.random.normal(jax.random.PRNGKey(1), (512, in_features), jnp.float32)
    y_big = jax.block_until_ready(linear_model_forward(x_big, params, block_b=128))
    assert y_big.shape == (512,), y_big.shape
    assert jnp.allclose(y_big, ref_forward(x_big, params), atol=1e-2, rtol=1e-2)

    # 5) out_features > 1 path (output is transposed back to (B, OF) in the wrapper).
    params3 = init_params(jax.random.PRNGKey(7), in_features, neurons, 3)
    x_of3 = jax.random.normal(jax.random.PRNGKey(4), (16, in_features), jnp.float32)
    y_of3 = jax.block_until_ready(linear_model_forward(x_of3, params3))
    assert y_of3.shape == (16, 3), y_of3.shape
    assert jnp.allclose(y_of3, ref_forward(x_of3, params3), atol=1e-2, rtol=1e-2)

    print("KERNEL_OK")
</pallas_src>

<mosaic_0001>
module attributes {stable_mosaic.version = 11 : i64} {
  func.func @mlp_kernel(%arg0: i32, %arg1: memref<8x16xf32, #tpu.memory_space<vmem>>, %arg2: memref<32x16xbf16, #tpu.memory_space<vmem>>, %arg3: memref<32x1xf32, #tpu.memory_space<vmem>>, %arg4: memref<32x32xbf16, #tpu.memory_space<vmem>>, %arg5: memref<32x1xf32, #tpu.memory_space<vmem>>, %arg6: memref<1x32xbf16, #tpu.memory_space<vmem>>, %arg7: memref<1x1xf32, #tpu.memory_space<vmem>>, %arg8: memref<1x8xf32, #tpu.memory_space<vmem>>) attributes {dimension_semantics = [#tpu.dimension_semantics<parallel>], iteration_bounds = array<i64: 1>, scalar_prefetch = 0 : i64, scratch_operands = 0 : i64, tpu.core_type = #tpu.core_type<tc>, window_params = [{transform_indices = @transform_0, window_bounds = array<i64: 8, 16>}, {pipeline_mode = #tpu.pipeline_mode<synchronous>, transform_indices = @transform_1, window_bounds = array<i64: 32, 16>}, {pipeline_mode = #tpu.pipeline_mode<synchronous>, transform_indices = @transform_2, window_bounds = array<i64: 32, 1>}, {pipeline_mode = #tpu.pipeline_mode<synchronous>, transform_indices = @transform_3, window_bounds = array<i64: 32, 32>}, {pipeline_mode = #tpu.pipeline_mode<synchronous>, transform_indices = @transform_4, window_bounds = array<i64: 32, 1>}, {pipeline_mode = #tpu.pipeline_mode<synchronous>, transform_indices = @transform_5, window_bounds = array<i64: 1, 32>}, {pipeline_mode = #tpu.pipeline_mode<synchronous>, transform_indices = @transform_6, window_bounds = array<i64: 1, 1>}, {transform_indices = @transform_7, window_bounds = array<i64: 1, 8>}]} {
    %c0 = arith.constant 0 : index
    %c0_0 = arith.constant 0 : index
    %0 = vector.load %arg1[%c0, %c0_0] : memref<8x16xf32, #tpu.memory_space<vmem>>, vector<8x16xf32>
    %1 = arith.truncf %0 : vector<8x16xf32> to vector<8x16xbf16>
    %c0_1 = arith.constant 0 : index
    %c0_2 = arith.constant 0 : index
    %2 = vector.load %arg2[%c0_1, %c0_2] : memref<32x16xbf16, #tpu.memory_space<vmem>>, vector<32x16xbf16>
    %cst = arith.constant dense<0.000000e+00> : vector<32x8xf32>
    %3 = tpu.matmul %2, %1, %cst {dimension_numbers = #tpu.dot_dimension_numbers<[1], [1], [0], [0], [0, 0, 1, 0], [], []>} : vector<32x16xbf16>, vector<8x16xbf16>, vector<32x8xf32> -> vector<32x8xf32>
    %c0_3 = arith.constant 0 : index
    %c0_4 = arith.constant 0 : index
    %4 = vector.load %arg3[%c0_3, %c0_4] : memref<32x1xf32, #tpu.memory_space<vmem>>, vector<32x1xf32>
    %5 = vector.broadcast %4 : vector<32x1xf32> to vector<32x8xf32>
    %6 = arith.addf %3, %5 : vector<32x8xf32>
    %cst_5 = arith.constant 0.000000e+00 : f32
    %7 = vector.broadcast %cst_5 : f32 to vector<32x8xf32>
    %8 = arith.maximumf %6, %7 : vector<32x8xf32>
    %c0_6 = arith.constant 0 : index
    %c0_7 = arith.constant 0 : index
    %9 = vector.load %arg4[%c0_6, %c0_7] : memref<32x32xbf16, #tpu.memory_space<vmem>>, vector<32x32xbf16>
    %10 = arith.truncf %8 : vector<32x8xf32> to vector<32x8xbf16>
    %cst_8 = arith.constant dense<0.000000e+00> : vector<32x8xf32>
    %11 = tpu.matmul %9, %10, %cst_8 {dimension_numbers = #tpu.dot_dimension_numbers<[1], [0], [0], [1], [0, 0, 1, 1], [], []>} : vector<32x32xbf16>, vector<32x8xbf16>, vector<32x8xf32> -> vector<32x8xf32>
    %c0_9 = arith.constant 0 : index
    %c0_10 = arith.constant 0 : index
    %12 = vector.load %arg5[%c0_9, %c0_10] : memref<32x1xf32, #tpu.memory_space<vmem>>, vector<32x1xf32>
    %13 = vector.broadcast %12 : vector<32x1xf32> to vector<32x8xf32>
    %14 = arith.addf %11, %13 : vector<32x8xf32>
    %cst_11 = arith.constant 0.000000e+00 : f32
    %15 = vector.broadcast %cst_11 : f32 to vector<32x8xf32>
    %16 = arith.maximumf %14, %15 : vector<32x8xf32>
    %c0_12 = arith.constant 0 : index
    %c0_13 = arith.constant 0 : index
    %17 = vector.load %arg6[%c0_12, %c0_13] : memref<1x32xbf16, #tpu.memory_space<vmem>>, vector<1x32xbf16>
    %18 = arith.truncf %16 : vector<32x8xf32> to vector<32x8xbf16>
    %cst_14 = arith.constant dense<0.000000e+00> : vector<1x8xf32>
    %19 = tpu.matmul %17, %18, %cst_14 {dimension_numbers = #tpu.dot_dimension_numbers<[1], [0], [0], [1], [0, 0, 1, 1], [], []>} : vector<1x32xbf16>, vector<32x8xbf16>, vector<1x8xf32> -> vector<1x8xf32>
    %c0_15 = arith.constant 0 : index
    %c0_16 = arith.constant 0 : index
    %20 = vector.load %arg7[%c0_15, %c0_16] : memref<1x1xf32, #tpu.memory_space<vmem>>, vector<1x1xf32>
    %21 = vector.broadcast %20 : vector<1x1xf32> to vector<1x8xf32>
    %22 = arith.addf %19, %21 : vector<1x8xf32>
    %c0_17 = arith.constant 0 : index
    %c0_18 = arith.constant 0 : index
    %23 = vector.load %arg8[%c0_17, %c0_18] : memref<1x8xf32, #tpu.memory_space<vmem>>, vector<1x8xf32>
    tpu.vector_store %arg8[%c0_17, %c0_18], %22 {strides = array<i32>} : memref<1x8xf32, #tpu.memory_space<vmem>>, vector<1x8xf32>,
    return
  }
  func.func @transform_0(%arg0: i32) -> (i32, i32) {
    %c0_i32 = arith.constant 0 : i32
    %c0_i32_0 = arith.constant 0 : i32
    return %arg0, %c0_i32 : i32, i32
  }
  func.func @transform_1(%arg0: i32) -> (i32, i32) {
    %c0_i32 = arith.constant 0 : i32
    %c0_i32_0 = arith.constant 0 : i32
    %c0_i32_1 = arith.constant 0 : i32
    return %c0_i32, %c0_i32_0 : i32, i32
  }
  func.func @transform_2(%arg0: i32) -> (i32, i32) {
    %c0_i32 = arith.constant 0 : i32
    %c0_i32_0 = arith.constant 0 : i32
    %c0_i32_1 = arith.constant 0 : i32
    return %c0_i32, %c0_i32_0 : i32, i32
  }
  func.func @transform_3(%arg0: i32) -> (i32, i32) {
    %c0_i32 = arith.constant 0 : i32
    %c0_i32_0 = arith.constant 0 : i32
    %c0_i32_1 = arith.constant 0 : i32
    return %c0_i32, %c0_i32_0 : i32, i32
  }
  func.func @transform_4(%arg0: i32) -> (i32, i32) {
    %c0_i32 = arith.constant 0 : i32
    %c0_i32_0 = arith.constant 0 : i32
    %c0_i32_1 = arith.constant 0 : i32
    return %c0_i32, %c0_i32_0 : i32, i32
  }
  func.func @transform_5(%arg0: i32) -> (i32, i32) {
    %c0_i32 = arith.constant 0 : i32
    %c0_i32_0 = arith.constant 0 : i32
    %c0_i32_1 = arith.constant 0 : i32
    return %c0_i32, %c0_i32_0 : i32, i32
  }
  func.func @transform_6(%arg0: i32) -> (i32, i32) {
    %c0_i32 = arith.constant 0 : i32
    %c0_i32_0 = arith.constant 0 : i32
    %c0_i32_1 = arith.constant 0 : i32
    return %c0_i32, %c0_i32_0 : i32, i32
  }
  func.func @transform_7(%arg0: i32) -> (i32, i32) {
    %c0_i32 = arith.constant 0 : i32
    %c0_i32_0 = arith.constant 0 : i32
    return %c0_i32, %arg0 : i32, i32
  }
}

</mosaic_0001>

<bundles_post_ra>
// kernel: tpu_custom_call.1
= control target key start
LH: loop header
LB: loop body
LE: loop exit
PB: predicated region body
PF: predicated region fallthrough
CT: control target
= control target key end

     0   :  { %s489_s0 = inlined_call_operand.vmem [shape: f32[8,16], index: 0, kind: input, shape index: {}]   ;;  %s490_s1 = inlined_call_operand.vmem [shape: bf16[32,16], index: 1, kind: input, shape index: {}]   ;;  %s491_s2 = inlined_call_operand.vmem [shape: f32[32,1], index: 2, kind: input, shape index: {}]   ;;  %s492_s3 = inlined_call_operand.vmem [shape: bf16[32,32], index: 3, kind: input, shape index: {}]   ;;  %s493_s4 = inlined_call_operand.vmem [shape: f32[32,1], index: 4, kind: input, shape index: {}]   ;;  %s494_s5 = inlined_call_operand.vmem [shape: bf16[1,32], index: 5, kind: input, shape index: {}]   ;;  %s495_s6 = inlined_call_operand.<no memory space> [shape: f32[1,1], index: 6, kind: input, shape index: {}]   ;;  %s496_s7 = inlined_call_operand.hbm [shape: f32[1,8], index: 7, kind: output, shape index: {}]  }
   0x1   :  { %v12_v0 = vstv %s495_s6 }
   0x2   :  { %13 = vst [vmem:[#allocation2] sm:$0x1] %v12_v0 }
   0x3   :  { %v30_v1 = vld [vmem:[%s489_s0] sm:$0xff]  ;;  %vm70_vm0 = vcmask 130048   ;;  %v381_v4 = vmov 0   ;;  %v38_v7 = vld [vmem:[%s491_s2 + $0x10] sm:$0xff]  ;;  %v37_v8 = vld [vmem:[%s491_s2 + $0x8] sm:$0xff] }
   0x4   :  { %v31_v2 = vpack.c.bf16 %v30_v1, %v30_v1  ;;  %v353_v3 = vld [vmem:[%s490_s1] sm:$0xff]   ;;  %351 = vset.pattern.permute.xlu0 %v381_v4  ;;  %352 = vset.pattern.permute.xlu1 %v381_v4  ;;  %v39_v9 = vld [vmem:[%s491_s2 + $0x18] sm:$0xff] }
   0x5   :  { %v36_v5 = vld [vmem:[%s491_s2] sm:$0xff]  ;;  %326 = vmatprep.mubr.msk.bf16.mxu0 %vm70_vm0, %v353_v3  ;;  %52 = vperm.xlu1 %352, %v38_v7  }
   0x6   :  { %346 = vmatprep.subr.msk.bf16.mxu0 %vm70_vm0, %v31_v2  ;;  %v78_v6 = vsel %vm70_vm0, %v31_v2, 0  ;;  %42 = vperm.xlu0 %351, %v36_v5  }
   0x7   :  { %325 = vmatpush3.bf16.xpose.msra.mxu0 %v78_v6 }
   0x8   :  { %14 = vsyncpa [#allocation4], 0  ;;  %v354_v10 = vld [vmem:[%s490_s1 + $0x8] sm:$0xff]   ;;  %v139_v11 = vld [vmem:[%s493_s4] sm:$0xff]  ;;  %vm173_vm1 = vcmask 261120   ;;  %v382_v36 = vmov 0.0   ;;  %v242_v56 = vlaneseq }
   0x9   :  { %57 = vperm.xlu1 %352, %v39_v9   ;;  %v140_v12 = vld [vmem:[%s493_s4 + $0x8] sm:$0xff]  ;;  %v141_v13 = vld [vmem:[%s493_s4 + $0x10] sm:$0xff]  ;;  %v142_v14 = vld [vmem:[%s493_s4 + $0x18] sm:$0xff]  ;;  %338 = vmatprep.subr.bf16.mxu0 %v382_v36  ;;  %vm383_vm2 = vmmov 0   ;;  %s384_s25 = smov [#allocation3]   ;;  %vm289_vm3 = vcmask 57344  }
   0xa   :  { %47 = vperm.xlu0 %351, %v37_v8   ;;  %v236_v15 = vld [vmem:[#allocation2] sm:$0x1]  ;;  %v356_v35 = vld [vmem:[%s492_s3 + $0x8] sm:$0xff]   ;;  %v243_v57 = vshrl.u32 %v242_v56, 7  ;;  %s297_s26 = sshll.u32 %s384_s25, 4  ;;  %s298_s26 = int_to_ptr.vmem [resolvable:$true] %s297_s26 }
   0xb   :  { %v355_v16 = vld [vmem:[%s492_s3] sm:$0xff]   ;;  %s357_s27 = scalar_lea.vmem %s298_s26, 16  ;;  %p362_p1 = scmp.lt.s32.totalorder %s298_s26, %s298_s26 }
   0xc   :  { %334 = vmatprep.mubr.msk.bf16.mxu1 %vm173_vm1, %v355_v16  ;;  %v233_v55 = vld [vmem:[%s494_s5] sm:$0x1]  ;;  %v244_v58 = vsub.s32 0, %v243_v57  ;;  %p358_p0 = scmp.ne.s32.totalorder %s298_s26, %s357_s27  ;;  %s361_s5 = scalar_lea.vmem %s298_s26, 32 }
   0xd   :  { %150 = vperm.xlu1 %352, %v140_v12   ;;  %p363_p2 = scmp.lt.s32.totalorder %s361_s5, %s357_s27 }
   0xe   :  { %327 = vmatmul.mubr.msk.bf16.vlgmr.msra.gmra.mrb[0].mxu0 %vm70_vm0, %v354_v10  ;;  %145 = vperm.xlu0 %351, %v139_v11  }
   0xf   :  { %342 = vmatprep.mubr.msk.bf16.mxu0 %vm383_vm2, %v382_v36  ;;  %p364_p3 = por %p363_p2, %p362_p1 }
  0x11   :  { %160 = vperm.xlu1 %352, %v142_v14   ;;  %p365_p4 = pnand %p364_p3, %p358_p0 }
  0x12   :  { %155 = vperm.xlu0 %351, %v141_v13  }
  0x16   :  { %239 = vperm.xlu0 %351, %v236_v15  }
  0x84   :  { %v53_v17 = vpop.permute.xlu1 %52 }
  0x85   :  { %v43_v18 = vpop.permute.xlu0 %42 }
  0x88   :  { %v58_v22 = vpop.permute.xlu1 %57 }
  0x89   :  { %v48_v25 = vpop.permute.xlu0 %47 }
  0x8c   :  { %v151_v38 = vpop.permute.xlu1 %150 }
  0x8d   :  { %v146_v37 = vpop.permute.xlu0 %145 }
  0x90   :  { %v161_v43 = vpop.permute.xlu1 %160 }
  0x91   :  { %v156_v39 = vpop.permute.xlu0 %155 }
  0x95   :  { %v240_v59 = vpop.permute.xlu0 %239 }
  0x96   :  { %v245_v60 = vrot.slane %v240_v59, %v244_v58 }
  0xe1   :  { %v328_v19 = vpop.f32.mrb[0].mxu0 }
  0xe2   :  { %v123_v20 = vadd.f32 %v328_v19, %v53_v17  ;;  %v114_v21 = vpop.f32.mrb[1].mxu0 }
  0xe3   :  { %v115_v23 = vadd.f32 %v114_v21, %v43_v18  ;;  %v329_v24 = vpop.f32.mrb[2].mxu0 }
  0xe4   :  { %v126_v26 = vadd.f32 %v329_v24, %v58_v22  ;;  %v117_v27 = vpop.f32.mrb[3].mxu0  ;;  %v131_v29 = vmax.f32 %v123_v20, 0.0 }
  0xe5   :  { %v118_v28 = vadd.f32 %v117_v27, %v48_v25  ;;  %v129_v31 = vmax.f32 %v115_v23, 0.0 }
  0xe6   :  { %v132_v30 = vmax.f32 %v126_v26, 0.0 }
  0xe7   :  { %v130_v32 = vmax.f32 %v118_v28, 0.0 }
  0xe8   :  { %v138_v33 = vpack.c.bf16 %v132_v30, %v131_v29 }
  0xe9   :  { %v137_v34 = vpack.c.bf16 %v130_v32, %v129_v31 }
  0xeb   :  { %330 = vmatprep.subr.bf16.mxu1 %v137_v34 }
  0xec   :  { %331 = vmatpush3.bf16.msra.mxu1 %v137_v34 }
  0xed   :  { %332 = vmatprep.subr.bf16.mxu1 %v138_v33 }
  0xf0   :  { %333 = vmatpush3.bf16.msra.mxu1 %v138_v33 }
  0xf3   :  { %335 = vmatmul.mubr.msk.bf16.vlgmr.msra.gmra.mrb[0].mxu1 %vm173_vm1, %v356_v35 }
 0x1c6   :  { %v336_v40 = vpop.f32.mrb[0].mxu1 }
 0x1c7   :  { %v223_v41 = vadd.f32 %v336_v40, %v156_v39  ;;  %v214_v42 = vpop.f32.mrb[1].mxu1 }
 0x1c8   :  { %v215_v44 = vadd.f32 %v214_v42, %v146_v37  ;;  %v337_v45 = vpop.f32.mrb[2].mxu1 }
 0x1c9   :  { %v226_v46 = vadd.f32 %v337_v45, %v161_v43  ;;  %v217_v47 = vpop.f32.mrb[3].mxu1  ;;  %v231_v49 = vmax.f32 %v223_v41, 0.0 }
 0x1ca   :  { %v218_v48 = vadd.f32 %v217_v47, %v151_v38  ;;  %v229_v51 = vmax.f32 %v215_v44, 0.0 }
 0x1cb   :  { %v232_v50 = vmax.f32 %v226_v46, 0.0 }
 0x1cc   :  { %v230_v52 = vmax.f32 %v218_v48, 0.0 }
 0x1cd   :  { %v235_v53 = vpack.c.bf16 %v232_v50, %v231_v49 }
 0x1ce   :  { %v234_v54 = vpack.c.bf16 %v230_v52, %v229_v51 }
 0x1d0   :  { %339 = vmatpush3.bf16.msra.mxu0 %v234_v54 }
 0x1d1   :  { %340 = vmatprep.subr.bf16.mxu0 %v382_v36 }
 0x1d4   :  { %341 = vmatpush3.bf16.msra.mxu0 %v235_v53 }
 0x1d7   :  { %343 = vmatmul.mubr.msk.bf16.vlgmr.msra.gmra.mrb[4].mxu0 %vm173_vm1, %v233_v55 }
 0x2aa   :  { %v283_v61 = vpop.f32.mrb[4].mxu0 }
 0x2ab   :  { %v284_v62 = vadd.f32 %v283_v61, %v245_v60  ;;  %v344_v63 = vpop.f32.mrb[5].mxu0 }
 0x2ac   :  { %v286_v0 = vpop.f32.mrb[6].mxu0 }
 0x2ad   :  { %v345_v1 = vpop.f32.mrb[7].mxu0  ;;  %290 = vst.msk [vmem:[#allocation3] sm:$0x1] %vm289_vm3, %v284_v62 }
 0x2ae   :  { %368 = shalt.err (!%p365_p4)
}
 0x2af   :  { %s369_s30 = scalar_lea.hbm %s496_s7, 16 }
 0x2b0   :  { %p370_p5 = scmp.ne.s32.totalorder %s496_s7, %s369_s30  ;;  %p373_p6 = scmp.lt.u32.totalorder %s369_s30, %s496_s7 }
 0x2b2   :  { %p375_p7 = pnand %p373_p6, %p370_p5 }
 0x2b4   :  { %378 = shalt.err (!%p375_p7)
}
 0x2b5   :  { %300 = dma.vmem_to_hbm [thread:$0]  %s298_s26, 16, %s496_s7, [#allocation4]  }
 0x2b6   :  { %379 = dma.done.wait [#allocation4], 16  }
 0x2b7   :  { %380 = vsyncadd [#allocation4], 4294967280 }
 0x2b8   :  { %304 = vsyncpa [#allocation4], 1 }

</bundles_post_ra>
